<compile_context>
chip_gen: v5e
topology: v5e:2x2
jax: 0.10.0
libtpu: 0.0.40
codegen_flags: <defaults>
</compile_context>

<pallas_src>
import functools

import jax
import jax.numpy as jnp
from jax.experimental import pallas as pl
from jax.experimental.pallas import tpu as pltpu

_COMPUTE_DTYPE = jnp.bfloat16
_LANE = 128


def _vmem_limit_bytes():
    # Generation-aware scoped-VMEM limit: ~96 MiB on 128-MiB parts (v5e/v6e),
    # ~32 MiB on 64-MiB parts (v7x).
    try:
        cap = int(pltpu.get_tpu_info().vmem_capacity_bytes)
    except Exception:
        cap = 64 * 1024 * 1024
    return int(min(96 * 2 ** 20, max(32 * 2 ** 20, cap - 32 * 2 ** 20)))


_VMEM_LIMIT = _vmem_limit_bytes()


# ----------------------------------------------------------------------------
# Kernels
# ----------------------------------------------------------------------------
def _mm_kernel(x_ref, w_ref, b_ref, o_ref, *, relu):
    """y = act(x @ w + b); no K grid axis (weight resident, fetched once)."""
    y = jnp.dot(x_ref[...], w_ref[...], preferred_element_type=jnp.float32)
    y = y + b_ref[...]
    if relu:
        y = jnp.maximum(y, 0.0)
    o_ref[...] = y.astype(o_ref.dtype)


def _mm_res_kernel(x_ref, w_ref, b_ref, r_ref, o_ref, *, relu):
    """y = act(x @ w + b + residual)."""
    y = jnp.dot(x_ref[...], w_ref[...], preferred_element_type=jnp.float32)
    y = y + b_ref[...] + r_ref[...].astype(jnp.float32)
    if relu:
        y = jnp.maximum(y, 0.0)
    o_ref[...] = y.astype(o_ref.dtype)


def _mm_dual_kernel(x_ref, w_ref, b_ref, xs_ref, ws_ref, bs_ref, o_ref):
    """Final 1x1 conv fused with the projection shortcut:
       o = relu(x @ w + b + xs @ ws + bs)."""
    acc = jnp.dot(x_ref[...], w_ref[...], preferred_element_type=jnp.float32)
    acc += jnp.dot(xs_ref[...], ws_ref[...], preferred_element_type=jnp.float32)
    y = acc + b_ref[...] + bs_ref[...]
    o_ref[...] = jnp.maximum(y, 0.0).astype(o_ref.dtype)


def _conv3x3_kernel(x_ref, w_ref, b_ref, o_ref, acc_ref, *, stride, Wq, tHo):
    """3x3 conv + folded-BN bias + ReLU over one row-block of one image.

    x_ref  : (1, s*s, Hq*Wq, C)    flattened space-to-depth planes (resident
                                   across the row-block grid axis)
    w_ref  : (9, C, Cout)          scale-folded tap weights (kh-major)
    b_ref  : (1, Cout)             folded BN bias
    o_ref  : (1, 1, tHo*Wq, Cout)  output row-block (garbage columns at
                                   j >= Wo are stripped by the caller)
    acc_ref: (tHo*Wq, Cout) f32    VMEM accumulator
    """
    r = pl.program_id(1)
    m_rows = tHo * Wq
    base = r * m_rows
    if m_rows % 8 == 0:
        base = pl.multiple_of(base, 8)
    for t in range(9):
        kh, kw = t // 3, t % 3
        ph, dh = kh % stride, kh // stride
        pw, dw = kw % stride, kw // stride
        # Contiguous 2-D slice of the flattened plane: no reshape, no copy.
        lhs = x_ref[0, ph * stride + pw, pl.ds(base + dh * Wq + dw, m_rows), :]
        contrib = jnp.dot(lhs, w_ref[t], preferred_element_type=jnp.float32)
        if t == 0:
            acc_ref[...] = contrib
        else:
            acc_ref[...] += contrib
    y = acc_ref[...] + b_ref[...]
    o_ref[0, 0] = jnp.maximum(y, 0.0).astype(o_ref.dtype)


# ----------------------------------------------------------------------------
# Tiling helpers
# ----------------------------------------------------------------------------
def _round_up(x, m):
    return ((x + m - 1) // m) * m


def _choose_tile_m(M):
    """Pick an M tile from the divisors of M (no row padding in the common
    path); prefer >=2 grid steps for pipelining / megacore."""
    for t in (1024, 512, 256, 128, 64, 32, 16, 8):
        if M % t == 0 and M // t >= 2:
            return t
    if M % 8 == 0 and M <= 1024:
        return M
    return min(512, 8 * pl.cdiv(M, 8))


def _choose_row_tile(Ho, Wq):
    """Output-row tile for the 3x3 conv (target ~512 pixel rows per step)."""
    cap = max(1, 512 // Wq)
    if Ho <= cap:
        if Ho >= 8 and Ho % 2 == 0:
            return Ho // 2          # >=2 row blocks when the image allows it
        return Ho
    best = 1
    for t in range(1, cap + 1):
        if Ho % t == 0:
            best = t
    if best * 2 >= cap:
        return best
    return cap                      # fall back to padded row blocks


def _pad_rows(a, m_padded):
    M = a.shape[0]
    if m_padded == M:
        return a
    return jnp.pad(a, ((0, m_padded - M), (0, 0)))


# ----------------------------------------------------------------------------
# Pallas wrappers
# ----------------------------------------------------------------------------
def matmul_bn(x, w, bias, *, relu=True, residual=None, out_dtype=_COMPUTE_DTYPE):
    """act((x @ w) + bias [+ residual]); BN scale already folded into w.

    Weights are assumed to fit VMEM (true for all ResNet 1x1 convs), so there
    is no K reduction grid axis and the weight is fetched from HBM once.
    """
    M, K = x.shape
    Nc = w.shape[1]
    tm = _choose_tile_m(M)
    Mp = pl.cdiv(M, tm) * tm
    x = _pad_rows(x, Mp)
    if residual is not None:
        residual = _pad_rows(residual, Mp)

    bias2 = bias.reshape(1, Nc).astype(jnp.float32)
    in_specs = [
        pl.BlockSpec((tm, K), lambda i: (i, 0)),
        pl.BlockSpec((K, Nc), lambda i: (0, 0)),
        pl.BlockSpec((1, Nc), lambda i: (0, 0)),
    ]
    args = [x, w, bias2]
    if residual is not None:
        in_specs.append(pl.BlockSpec((tm, Nc), lambda i: (i, 0)))
        args.append(residual)
        kernel = functools.partial(_mm_res_kernel, relu=relu)
    else:
        kernel = functools.partial(_mm_kernel, relu=relu)

    out = pl.pallas_call(
        kernel,
        out_shape=jax.ShapeDtypeStruct((Mp, Nc), out_dtype),
        grid=(Mp // tm,),
        in_specs=in_specs,
        out_specs=pl.BlockSpec((tm, Nc), lambda i: (i, 0)),
        compiler_params=pltpu.CompilerParams(
            dimension_semantics=("parallel",),
            vmem_limit_bytes=_VMEM_LIMIT),
    )(*args)
    return out[:M] if Mp != M else out


def matmul_dual_bn(x, w, b, xs, ws, bs, out_dtype=_COMPUTE_DTYPE):
    """relu(x @ w + b + xs @ ws + bs): final 1x1 conv fused with the shortcut
    conv, so the shortcut output never touches HBM."""
    M, K = x.shape
    Nc = w.shape[1]
    Ks = xs.shape[1]
    tm = _choose_tile_m(M)
    Mp = pl.cdiv(M, tm) * tm
    x = _pad_rows(x, Mp)
    xs = _pad_rows(xs, Mp)
    b2 = b.reshape(1, Nc).astype(jnp.float32)
    bs2 = bs.reshape(1, Nc).astype(jnp.float32)

    out = pl.pallas_call(
        _mm_dual_kernel,
        out_shape=jax.ShapeDtypeStruct((Mp, Nc), out_dtype),
        grid=(Mp // tm,),
        in_specs=[
            pl.BlockSpec((tm, K), lambda i: (i, 0)),
            pl.BlockSpec((K, Nc), lambda i: (0, 0)),
            pl.BlockSpec((1, Nc), lambda i: (0, 0)),
            pl.BlockSpec((tm, Ks), lambda i: (i, 0)),
            pl.BlockSpec((Ks, Nc), lambda i: (0, 0)),
            pl.BlockSpec((1, Nc), lambda i: (0, 0)),
        ],
        out_specs=pl.BlockSpec((tm, Nc), lambda i: (i, 0)),
        compiler_params=pltpu.CompilerParams(
            dimension_semantics=("parallel",),
            vmem_limit_bytes=_VMEM_LIMIT),
    )(x, w, b2, xs, ws, bs2)
    return out[:M] if Mp != M else out


def conv3x3_bn_relu(y, w9, bias, stride, out_dtype=_COMPUTE_DTYPE):
    """3x3 conv (pad=1, given stride) + folded-BN bias + ReLU, no im2col.

    y  : (N, H, W, C)  bf16 activations (C lane-padded upstream)
    w9 : (9, C, Cout)  scale-folded bf16 tap weights (kh-major, kw-minor)

    The padded activation is space-to-depth'd once (absorbing the stride) and
    each plane is flattened to (Hq*Wq, C); inside the kernel every tap is a
    contiguous row-slice of the resident plane -> pure 2-D matmuls, no
    reshapes/copies.  The extra columns (j >= Wo) computed by the flattened
    formulation are stripped once at the wrapper.
    """
    N, H, W, C = y.shape
    s = stride
    Cout = w9.shape[-1]
    Ho = (H - 1) // s + 1
    Wo = (W - 1) // s + 1
    Wq = pl.cdiv(W + 2, s)
    tHo = _choose_row_tile(Ho, Wq)
    nR = pl.cdiv(Ho, tHo)
    HoP = nR * tHo
    dh_max = 2 // s                        # 2 for stride 1, 1 for stride 2
    Hq = HoP + dh_max + 1                  # covers the horizontal-tap overhang

    # conv padding (1 top/left) + bottom/right padding to the s2d geometry.
    yp = jnp.pad(y, ((0, 0), (1, s * Hq - (H + 1)), (1, s * Wq - (W + 1)), (0, 0)))
    # space-to-depth (absorbs stride), flatten each plane's spatial dims.
    ysd = yp.reshape(N, Hq, s, Wq, s, C).transpose(0, 2, 4, 1, 3, 5)
    ysd = ysd.reshape(N, s * s, Hq * Wq, C)

    L = Hq * Wq
    Mrow = tHo * Wq
    bias2 = bias.reshape(1, Cout).astype(jnp.float32)
    kernel = functools.partial(_conv3x3_kernel, stride=s, Wq=Wq, tHo=tHo)

    out = pl.pallas_call(
        kernel,
        out_shape=jax.ShapeDtypeStruct((N, nR, Mrow, Cout), out_dtype),
        grid=(N, nR),
        in_specs=[
            # whole image resident across the row-block axis (fetched once / n)
            pl.BlockSpec((1, s * s, L, C), lambda n, r: (n, 0, 0, 0)),
            pl.BlockSpec((9, C, Cout), lambda n, r: (0, 0, 0)),
            pl.BlockSpec((1, Cout), lambda n, r: (0, 0)),
        ],
        out_specs=pl.BlockSpec((1, 1, Mrow, Cout), lambda n, r: (n, r, 0, 0)),
        scratch_shapes=[pltpu.VMEM((Mrow, Cout), jnp.float32)],
        compiler_params=pltpu.CompilerParams(
            dimension_semantics=("parallel", "parallel"),
            vmem_limit_bytes=_VMEM_LIMIT),
    )(ysd, w9, bias2)

    # Free reshapes; the :Ho/:Wo slice drops padded rows + garbage columns.
    # TODO(synk): keep the padded geometry through the final fused matmul to
    # avoid this XLA slice copy.
    return out.reshape(N, HoP, Wq, Cout)[:, :Ho, :Wo, :]


# ----------------------------------------------------------------------------
# BN folding (scale goes into the weights, bias into the epilogue)
# ----------------------------------------------------------------------------
def fold_bn(bn, eps=1e-5):
    gamma, beta, mean, var = bn
    scale = gamma / jnp.sqrt(var + eps)
    bias = beta - mean * scale
    return scale, bias


# ----------------------------------------------------------------------------
# BottleNeck forward (Pallas)
# ----------------------------------------------------------------------------
def bottleneck_forward(x_nchw, params, stride, expansion=4):
    # NCHW -> NHWC / bf16 only at the block boundary; in a full ResNet the
    # inter-block chain stays NHWC bf16.
    x = jnp.transpose(x_nchw, (0, 2, 3, 1))
    N, H, W, Cin = x.shape
    Cmid = params["w1"].shape[0]
    Cout = params["w3"].shape[0]                       # Cmid * expansion
    Cmidp = _round_up(Cmid, _LANE)                     # lane-dense mid channels
    pad_c = Cmidp - Cmid

    # Fold BN scale into bf16 weights; pad mid channels with zero weights so
    # every intermediate activation is 128-lane dense at no extra HBM cost
    # (padded channels are exactly 0 after relu(0 + 0)).
    s1, b1 = fold_bn(params["bn1"])
    w1 = params["w1"][:, :, 0, 0].T * s1[None, :]
    w1 = jnp.pad(w1, ((0, 0), (0, pad_c))).astype(_COMPUTE_DTYPE)
    b1 = jnp.pad(b1, (0, pad_c))

    s2, b2 = fold_bn(params["bn2"])
    w2 = jnp.transpose(params["w2"], (2, 3, 1, 0)) * s2
    w2 = jnp.pad(w2, ((0, 0), (0, 0), (0, pad_c), (0, pad_c)))
    w2 = w2.reshape(9, Cmidp, Cmidp).astype(_COMPUTE_DTYPE)
    b2 = jnp.pad(b2, (0, pad_c))

    s3, b3 = fold_bn(params["bn3"])
    w3 = params["w3"][:, :, 0, 0].T * s3[None, :]
    w3 = jnp.pad(w3, ((0, pad_c), (0, 0))).astype(_COMPUTE_DTYPE)

    xb = x.astype(_COMPUTE_DTYPE)

    # --- 1x1 reduce conv + BN + ReLU (lane-dense Cmidp output) --------------
    y1 = matmul_bn(xb.reshape(-1, Cin), w1, b1, relu=True)
    y1 = y1.reshape(N, H, W, Cmidp)

    # --- 3x3 conv (stride, pad=1) + BN + ReLU --------------------------------
    y2 = conv3x3_bn_relu(y1, w2, b2, stride)
    _, Ho, Wo, _ = y2.shape
    y2 = y2.reshape(-1, Cmidp)

    # --- final 1x1 expand conv + BN, fused with shortcut + add + ReLU --------
    use_conv_shortcut = (stride != 1) or (Cin != Cout)
    if use_conv_shortcut:
        ss, bs = fold_bn(params["bns"])
        ws = (params["ws"][:, :, 0, 0].T * ss[None, :]).astype(_COMPUTE_DTYPE)
        # TODO(synk): fold this strided subsample into the fused kernel via a
        # strided index_map / manual DMA instead of an XLA gather.
        xs = xb[:, ::stride, ::stride, :].reshape(-1, Cin)
        y3 = matmul_dual_bn(y2, w3, b3, xs, ws, bs)
    else:
        y3 = matmul_bn(y2, w3, b3, relu=True, residual=xb.reshape(-1, Cin))

    out = y3.reshape(N, Ho, Wo, Cout)
    # NHWC -> NCHW + f32 only at the block/model boundary.
    return jnp.transpose(out, (0, 3, 1, 2)).astype(jnp.float32)


# ----------------------------------------------------------------------------
# Pure-JAX f32 reference (mirrors the PyTorch BottleNeck forward, NCHW)
# ----------------------------------------------------------------------------
def _conv_ref(x, w, stride=1, padding=0):
    return jax.lax.conv_general_dilated(
        x, w, window_strides=(stride, stride),
        padding=((padding, padding), (padding, padding)),
        dimension_numbers=("NCHW", "OIHW", "NCHW"),
        precision=jax.lax.Precision.HIGHEST)


def _bn_ref(x, bn, eps=1e-5):
    gamma, beta, mean, var = bn
    s = gamma / jnp.sqrt(var + eps)
    b = beta - mean * s
    return x * s[None, :, None, None] + b[None, :, None, None]


def bottleneck_ref(x, params, stride):
    Cin = x.shape[1]
    Cout = params["w3"].shape[0]
    y = _conv_ref(x, params["w1"])
    y = jnp.maximum(_bn_ref(y, params["bn1"]), 0.0)
    y = _conv_ref(y, params["w2"], stride=stride, padding=1)
    y = jnp.maximum(_bn_ref(y, params["bn2"]), 0.0)
    y = _conv_ref(y, params["w3"])
    y = _bn_ref(y, params["bn3"])
    if stride != 1 or Cin != Cout:
        sc = _bn_ref(_conv_ref(x, params["ws"], stride=stride), params["bns"])
    else:
        sc = x
    return jnp.maximum(y + sc, 0.0)


# ----------------------------------------------------------------------------
# Deterministic parameter construction + run
# ----------------------------------------------------------------------------
def make_params(key, in_ch, out_ch, expansion=4):
    ks = jax.random.split(key, 16)

    def bn(k, c):
        k1, k2, k3, k4 = jax.random.split(k, 4)
        gamma = 1.0 + 0.1 * jax.random.normal(k1, (c,), jnp.float32)
        beta = 0.1 * jax.random.normal(k2, (c,), jnp.float32)
        mean = 0.1 * jax.random.normal(k3, (c,), jnp.float32)
        var = 0.5 + 0.1 * jnp.abs(jax.random.normal(k4, (c,), jnp.float32))
        return (gamma, beta, mean, var)

    c_exp = out_ch * expansion
    return {
        "w1": 0.1 * jax.random.normal(ks[0], (out_ch, in_ch, 1, 1), jnp.float32),
        "bn1": bn(ks[1], out_ch),
        "w2": 0.1 * jax.random.normal(ks[2], (out_ch, out_ch, 3, 3), jnp.float32),
        "bn2": bn(ks[3], out_ch),
        "w3": 0.1 * jax.random.normal(ks[4], (c_exp, out_ch, 1, 1), jnp.float32),
        "bn3": bn(ks[5], c_exp),
        "ws": 0.1 * jax.random.normal(ks[6], (c_exp, in_ch, 1, 1), jnp.float32),
        "bns": bn(ks[7], c_exp),
    }


if __name__ == "__main__":
    key = jax.random.PRNGKey(0)
    k_x1, k_p1, k_x2, k_p2 = jax.random.split(key, 4)

    # Case 1: projection shortcut (stride=2, channel change).
    in_ch, out_ch, stride = 4, 8, 2
    x1 = jax.random.normal(k_x1, (2, in_ch, 16, 16), jnp.float32)   # NCHW
    p1 = make_params(k_p1, in_ch, out_ch)
    out1 = jax.block_until_ready(bottleneck_forward(x1, p1, stride))
    ref1 = jax.block_until_ready(bottleneck_ref(x1, p1, stride))
    assert out1.shape == ref1.shape == (2, out_ch * 4, 8, 8), out1.shape
    err1 = float(jnp.max(jnp.abs(out1 - ref1)))
    # bf16 storage / MXU path vs f32 reference -> relaxed tolerance.
    assert jnp.allclose(out1, ref1, rtol=3e-2, atol=3e-2), err1

    # Case 2: identity shortcut (stride=1, in_ch == out_ch * expansion).
    in_ch2, out_ch2, stride2 = 32, 8, 1
    x2 = jax.random.normal(k_x2, (2, in_ch2, 16, 16), jnp.float32)
    p2 = make_params(k_p2, in_ch2, out_ch2)
    out2 = jax.block_until_ready(bottleneck_forward(x2, p2, stride2))
    ref2 = jax.block_until_ready(bottleneck_ref(x2, p2, stride2))
    assert out2.shape == ref2.shape == (2, out_ch2 * 4, 16, 16), out2.shape
    err2 = float(jnp.max(jnp.abs(out2 - ref2)))
    assert jnp.allclose(out2, ref2, rtol=3e-2, atol=3e-2), err2

    print("KERNEL_OK")
</pallas_src>

<mosaic_0001>
module attributes {stable_mosaic.version = 11 : i64} {
  func.func @_mm_kernel(%arg0: i32, %arg1: memref<256x4xbf16, #tpu.memory_space<vmem>>, %arg2: memref<4x128xbf16, #tpu.memory_space<vmem>>, %arg3: memref<1x128xf32, #tpu.memory_space<vmem>>, %arg4: memref<256x128xbf16, #tpu.memory_space<vmem>>) attributes {dimension_semantics = [#tpu.dimension_semantics<parallel>], iteration_bounds = array<i64: 2>, scalar_prefetch = 0 : i64, scratch_operands = 0 : i64, tpu.core_type = #tpu.core_type<tc>, window_params = [{transform_indices = @transform_0, window_bounds = array<i64: 256, 4>}, {pipeline_mode = #tpu.pipeline_mode<synchronous>, transform_indices = @transform_1, window_bounds = array<i64: 4, 128>}, {pipeline_mode = #tpu.pipeline_mode<synchronous>, transform_indices = @transform_2, window_bounds = array<i64: 1, 128>}, {transform_indices = @transform_3, window_bounds = array<i64: 256, 128>}]} {
    %c0 = arith.constant 0 : index
    %c0_0 = arith.constant 0 : index
    %0 = vector.load %arg1[%c0, %c0_0] : memref<256x4xbf16, #tpu.memory_space<vmem>>, vector<256x4xbf16>
    %c0_1 = arith.constant 0 : index
    %c0_2 = arith.constant 0 : index
    %1 = vector.load %arg2[%c0_1, %c0_2] : memref<4x128xbf16, #tpu.memory_space<vmem>>, vector<4x128xbf16>
    %cst = arith.constant dense<0.000000e+00> : vector<256x128xf32>
    %2 = tpu.matmul %0, %1, %cst {dimension_numbers = #tpu.dot_dimension_numbers<[1], [0], [0], [1], [0, 0, 1, 1], [], []>} : vector<256x4xbf16>, vector<4x128xbf16>, vector<256x128xf32> -> vector<256x128xf32>
    %c0_3 = arith.constant 0 : index
    %c0_4 = arith.constant 0 : index
    %3 = vector.load %arg3[%c0_3, %c0_4] : memref<1x128xf32, #tpu.memory_space<vmem>>, vector<1x128xf32>
    %4 = vector.broadcast %3 : vector<1x128xf32> to vector<256x128xf32>
    %5 = arith.addf %2, %4 : vector<256x128xf32>
    %cst_5 = arith.constant 0.000000e+00 : f32
    %6 = vector.broadcast %cst_5 : f32 to vector<256x128xf32>
    %7 = arith.maximumf %5, %6 : vector<256x128xf32>
    %8 = arith.truncf %7 : vector<256x128xf32> to vector<256x128xbf16>
    %c0_6 = arith.constant 0 : index
    %c0_7 = arith.constant 0 : index
    %9 = vector.load %arg4[%c0_6, %c0_7] : memref<256x128xbf16, #tpu.memory_space<vmem>>, vector<256x128xbf16>
    tpu.vector_store %arg4[%c0_6, %c0_7], %8 {strides = array<i32>} : memref<256x128xbf16, #tpu.memory_space<vmem>>, vector<256x128xbf16>,
    return
  }
  func.func @transform_0(%arg0: i32) -> (i32, i32) {
    %c0_i32 = arith.constant 0 : i32
    %c0_i32_0 = arith.constant 0 : i32
    return %arg0, %c0_i32 : i32, i32
  }
  func.func @transform_1(%arg0: i32) -> (i32, i32) {
    %c0_i32 = arith.constant 0 : i32
    %c0_i32_0 = arith.constant 0 : i32
    %c0_i32_1 = arith.constant 0 : i32
    return %c0_i32, %c0_i32_0 : i32, i32
  }
  func.func @transform_2(%arg0: i32) -> (i32, i32) {
    %c0_i32 = arith.constant 0 : i32
    %c0_i32_0 = arith.constant 0 : i32
    %c0_i32_1 = arith.constant 0 : i32
    return %c0_i32, %c0_i32_0 : i32, i32
  }
  func.func @transform_3(%arg0: i32) -> (i32, i32) {
    %c0_i32 = arith.constant 0 : i32
    %c0_i32_0 = arith.constant 0 : i32
    return %arg0, %c0_i32 : i32, i32
  }
}

</mosaic_0001>

<bundles_post_ra>
// kernel: tpu_custom_call.1
= control target key start
LH: loop header
LB: loop body
LE: loop exit
PB: predicated region body
PF: predicated region fallthrough
CT: control target
= control target key end

     0   :  { %8 = vsyncpa [#allocation3], 0  ;;  %s1104_s0 = inlined_call_operand.vmem [shape: bf16[512,4], index: 0, kind: input, shape index: {}]   ;;  %s1105_s1 = inlined_call_operand.vmem [shape: bf16[4,128], index: 1, kind: input, shape index: {}]   ;;  %s1106_s2 = inlined_call_operand.vmem [shape: f32[1,128], index: 2, kind: input, shape index: {}]   ;;  %s1107_s3 = inlined_call_operand.hbm [shape: bf16[512,128], index: 3, kind: output, shape index: {}]  }
   0x1   :  { %10 = vsyncpa [#allocation3 + $0x1], 0  ;;  %s941_s12 = smov 0   ;;  %s943_s13 = smov 0  }
   0x2   :  { %s945_s14 = smov 0   ;;  %s947_s15 = smov 0  }
   0x3 LB: > { %s962_s16 = sadd.s32 4294967295, %s917_s15   ;;  %s606_s17 = sadd.s32 4294967294, %s917_s15   ;;  %s917_s15 = sphi %s947_s15, %s1113_s15   ;;  %s913_s14 = sphi %s945_s14, %s1112_s14   ;;  %s909_s13 = sphi %s943_s13, %s1111_s13   ;;  %s905_s12 = sphi %s941_s12, %s1110_s12  }
   0x4   : > { %s966_s18 = sadd.s32 1, %s917_s15   ;;  %s91_s19 = sadd.s32 1, %s913_s14 }
   0x5   : > { %s88_s20 = ssub.s32 %s917_s15, %s966_s18  ;;  %p101_p0 = scmp.ne.s32.totalorder %s913_s14, %s909_s13 }
   0x6   : > { %p89_p1 = scmp.eq.s32.totalorder %s88_s20, 0  ;;  %p102_p2 = scmp.eq.s32.totalorder %s962_s16, 1 }
   0x7   : > { %p107_p3 = scmp.ne.s32.totalorder %s909_s13, %s905_s12  ;;  %p108_p4 = scmp.eq.s32.totalorder %s606_s17, 1 }
   0x8   : > { %s977_s21 = scalar_select %p89_p1, %s913_s14, %s91_s19  }
   0x9   : > { %p979_p5 = por %p102_p2, %p101_p0  ;;  %p983_p6 = por %p108_p4, %p107_p3 }
   0xa   : > { %p609_p7 = scmp.ge.s32.totalorder %s917_s15, 1  ;;  %p141_p8 = scmp.lt.s32.totalorder %s917_s15, 3 }
   0xc   : > { %p142_p9 = pnand %p609_p7, %p141_p8 }
   0xd   : > { %s611_s26 = sshll.u32 (!%p142_p9), %s962_s16, 5  ;;  %s162_s6 = sand.u32 (!%p142_p9), 1, %s909_s13  }
   0xe   : > { %145 = sbr.rel (%p142_p9) target bundleno = 224 (0xe0), region = 32  ;;  %p166_p10 = scmp.lt.s32.totalorder (!%p142_p9), %s611_s26, 63 }
   0xf   : > { %s610_s7 = sshll.u32 (!%p142_p9), %s162_s6, 7  ;;  %s714_s9 = sshll.u32 (!%p142_p9), %s962_s16, 7 }
  0x10   : > { %s1026_s8 = scalar_lea.vmem (!%p142_p9), [#allocation2], %s610_s7  ;;  %s540_s17 = scalar_lea.hbm (!%p142_p9), %s1107_s3, %s714_s9 }
  0x11   : > { %s541_s16 = sshll.u32 (!%p142_p9), %s1026_s8, 4  ;;  %s543_s19 = sshll.u32 (!%p142_p9), %s540_s17, 4  ;;  %s542_s16 = int_to_ptr.vmem [resolvable:$true] %s541_s16  ;;  %s544_s19 = int_to_ptr.hbm [resolvable:$true] %s543_s19 }
  0x12   : > { %s529_s20 = scalar_lea.sflag (!%p142_p9), [#allocation3], %s162_s6  ;;  %s869_s24 = sshra.s32 (!%p142_p9), %s544_s19, 4  ;;  %s870_s24 = int_to_ptr.hbm [resolvable:$true] %s869_s24 }
  0x13   : > { %v205_v0 = vld [vmem:[%s1105_s1] sm:$0x3]  ;;  %vm339_vm0 = vcmask 1041408   ;;  %s1115_s26 = smov (!%p166_p10, %s611_s26), 63  ;;  %vm290_vm1 = vcmask 31744   ;;  %s871_s25 = scalar_lea.hbm %s870_s24, 128 }
  0x14   : > { %v341_v1 = vsel %vm339_vm0, %v205_v0, 0  ;;  %s612_s27 = sshll.u32 %s1115_s26, 2  ;;  %v1015_v20 = vld [vmem:[%s1106_s2] ss:$0 sm:$0xff]  ;;  %p872_p11 = scmp.ne.s32.totalorder %s870_s24, %s871_s25 }
  0x15   : > { %350 = vmatpush.bf16.msra.mxu0 %v341_v1  ;;  %810 = vmatpush.bf16.msra.mxu1 %v341_v1  ;;  %s169_s30 = scalar_lea.vmem %s1104_s0, %s612_s27  ;;  %s875_s28 = scalar_lea.hbm %s1107_s3, 256 }
  0x16   : > { %811 = vmatpush.bf16.msra.mxu2 %v341_v1  ;;  %812 = vmatpush.bf16.msra.mxu3 %v341_v1  ;;  %v698_v2 = vld [vmem:[%s169_s30] sm:$0xff]  ;;  %v699_v6 = vld [vmem:[%s169_s30 + $0x8] sm:$0xff]  ;;  %v700_v10 = vld [vmem:[%s169_s30 + $0x10] sm:$0xff]  ;;  %p873_p12 = pnand %p872_p11, %p979_p5  ;;  %p876_p0 = scmp.lt.s32.totalorder %s870_s24, %s1107_s3 }
  0x17   : > { %v702_v3 = vld [vmem:[%s169_s30 + $0x20] sm:$0xff]  ;;  %v703_v7 = vld [vmem:[%s169_s30 + $0x28] sm:$0xff]  ;;  %v704_v11 = vld [vmem:[%s169_s30 + $0x30] sm:$0xff]  ;;  %p877_p1 = scmp.lt.s32.totalorder %s875_s28, %s871_s25 }
  0x18   : > { %v706_v4 = vld [vmem:[%s169_s30 + $0x40] sm:$0xff]  ;;  %677 = vmatmul.msk.bf16.vlgmr.msra.gmra.mxu0 %vm290_vm1, %v698_v2  ;;  %681 = vmatmul.msk.bf16.vlgmr.msra.gmra.mxu1 %vm290_vm1, %v702_v3  ;;  %v707_v8 = vld [vmem:[%s169_s30 + $0x48] sm:$0xff]  ;;  %v708_v12 = vld [vmem:[%s169_s30 + $0x50] sm:$0xff]  ;;  %p874_p13 = pneg %p873_p12 }
  0x19   : > { %v710_v5 = vld [vmem:[%s169_s30 + $0x60] sm:$0xff]  ;;  %685 = vmatmul.msk.bf16.vlgmr.msra.gmra.mxu2 %vm290_vm1, %v706_v4  ;;  %v711_v9 = vld [vmem:[%s169_s30 + $0x68] sm:$0xff]  ;;  %v712_v13 = vld [vmem:[%s169_s30 + $0x70] sm:$0xff]  ;;  %p878_p2 = por %p877_p1, %p876_p0 }
  0x1a   : > { %689 = vmatmul.msk.bf16.vlgmr.msra.gmra.mxu3 %vm290_vm1, %v710_v5  ;;  %v701_v14 = vld [vmem:[%s169_s30 + $0x18] sm:$0xff] }
  0x1b   : > { %v705_v15 = vld [vmem:[%s169_s30 + $0x38] sm:$0xff]  ;;  %p879_p3 = pnand %p878_p2, %p874_p13 }
  0x1c   : > { %v709_v16 = vld [vmem:[%s169_s30 + $0x58] sm:$0xff] }
  0x1d   : > { %v713_v17 = vld [vmem:[%s169_s30 + $0x78] sm:$0xff] }
  0x28   : > { %678 = vmatmul.msk.bf16.gmra.mxu0 %vm290_vm1, %v699_v6  ;;  %682 = vmatmul.msk.bf16.gmra.mxu1 %vm290_vm1, %v703_v7 }
  0x29   : > { %686 = vmatmul.msk.bf16.gmra.mxu2 %vm290_vm1, %v707_v8 }
  0x2a   : > { %690 = vmatmul.msk.bf16.gmra.mxu3 %vm290_vm1, %v711_v9 }
  0x38   : > { %679 = vmatmul.msk.bf16.gmra.mxu0 %vm290_vm1, %v700_v10  ;;  %683 = vmatmul.msk.bf16.gmra.mxu1 %vm290_vm1, %v704_v11 }
  0x39   : > { %687 = vmatmul.msk.bf16.gmra.mxu2 %vm290_vm1, %v708_v12 }
  0x3a   : > { %691 = vmatmul.msk.bf16.gmra.mxu3 %vm290_vm1, %v712_v13 }
  0x48   : > { %680 = vmatmul.msk.bf16.gmra.mxu0 %vm290_vm1, %v701_v14  ;;  %684 = vmatmul.msk.bf16.gmra.mxu1 %vm290_vm1, %v705_v15 }
  0x49   : > { %688 = vmatmul.msk.bf16.gmra.mxu2 %vm290_vm1, %v709_v16 }
  0x4a   : > { %692 = vmatmul.msk.bf16.gmra.mxu3 %vm290_vm1, %v713_v17 }
  0x95   : > { %v352_v18 = vpop.f32.mrf.mxu0  ;;  %v372_v19 = vpop.f32.mrf.mxu1 }
  0x96   : > { %v353_v21 = vadd.f32 %v1015_v20, %v352_v18  ;;  %v373_v22 = vadd.f32 %v1015_v20, %v372_v19 }
  0x98   : > { %v432_v29 = vmax.f32 %v353_v21, 0.0  ;;  %v440_v30 = vmax.f32 %v373_v22, 0.0 }
  0x9c   : > { %v392_v23 = vpop.f32.mrf.mxu2 }
  0x9d   : > { %v412_v24 = vpop.f32.mrf.mxu3  ;;  %v354_v25 = vpop.f32.mrf.mxu0  ;;  %v393_v35 = vadd.f32 %v1015_v20, %v392_v23 }
  0x9e   : > { %v374_v26 = vpop.f32.mrf.mxu1  ;;  %v355_v27 = vadd.f32 %v1015_v20, %v354_v25  ;;  %v413_v36 = vadd.f32 %v1015_v20, %v412_v24 }
  0x9f   : > { %v375_v28 = vadd.f32 %v1015_v20, %v374_v26  ;;  %v448_v43 = vmax.f32 %v393_v35, 0.0 }
  0xa0   : > { %v433_v31 = vmax.f32 %v355_v27, 0.0  ;;  %v456_v44 = vmax.f32 %v413_v36, 0.0 }
  0xa1   : > { %v441_v32 = vmax.f32 %v375_v28, 0.0 }
  0xa2   : > { %v718_v33 = vpack.c.bf16 %v433_v31, %v432_v29 }
  0xa3   : > { %v738_v34 = vpack.c.bf16 %v441_v32, %v440_v30 }
  0xa4   : > { %719 = vst [vmem:[%s1026_s8] sm:$0xff] %v718_v33   ;;  %v394_v37 = vpop.f32.mrf.mxu2 }
  0xa5   : > { %v414_v38 = vpop.f32.mrf.mxu3  ;;  %798 = vst [vmem:[%s1026_s8 + $0x20] sm:$0xff] %v738_v34   ;;  %v395_v39 = vadd.f32 %v1015_v20, %v394_v37  ;;  %v357_v41 = vpop.f32.mrf.mxu0 }
  0xa6   : > { %v415_v40 = vadd.f32 %v1015_v20, %v414_v38  ;;  %v377_v42 = vpop.f32.mrf.mxu1  ;;  %v358_v49 = vadd.f32 %v1015_v20, %v357_v41 }
  0xa7   : > { %v449_v45 = vmax.f32 %v395_v39, 0.0  ;;  %v378_v50 = vadd.f32 %v1015_v20, %v377_v42 }
  0xa8   : > { %v457_v46 = vmax.f32 %v415_v40, 0.0  ;;  %v434_v57 = vmax.f32 %v358_v49, 0.0 }
  0xa9   : > { %v758_v47 = vpack.c.bf16 %v449_v45, %v448_v43  ;;  %v442_v58 = vmax.f32 %v378_v50, 0.0 }
  0xaa   : > { %v778_v48 = vpack.c.bf16 %v457_v46, %v456_v44 }
  0xab   : > { %802 = vst [vmem:[%s1026_s8 + $0x40] sm:$0xff] %v758_v47  }
  0xac   : > { %806 = vst [vmem:[%s1026_s8 + $0x60] sm:$0xff] %v778_v48   ;;  %v397_v51 = vpop.f32.mrf.mxu2 }
  0xad   : > { %v417_v52 = vpop.f32.mrf.mxu3  ;;  %v359_v53 = vpop.f32.mrf.mxu0  ;;  %v398_v63 = vadd.f32 %v1015_v20, %v397_v51 }
  0xae   : > { %v379_v54 = vpop.f32.mrf.mxu1  ;;  %v360_v55 = vadd.f32 %v1015_v20, %v359_v53  ;;  %v418_v0 = vadd.f32 %v1015_v20, %v417_v52 }
  0xaf   : > { %v380_v56 = vadd.f32 %v1015_v20, %v379_v54  ;;  %v450_v7 = vmax.f32 %v398_v63, 0.0 }
  0xb0   : > { %v435_v59 = vmax.f32 %v360_v55, 0.0  ;;  %v458_v8 = vmax.f32 %v418_v0, 0.0 }
  0xb1   : > { %v443_v60 = vmax.f32 %v380_v56, 0.0 }
  0xb2   : > { %v723_v61 = vpack.c.bf16 %v435_v59, %v434_v57 }
  0xb3   : > { %v743_v62 = vpack.c.bf16 %v443_v60, %v442_v58 }
  0xb4   : > { %795 = vst [vmem:[%s1026_s8 + $0x8] sm:$0xff] %v723_v61   ;;  %v399_v1 = vpop.f32.mrf.mxu2 }
  0xb5   : > { %v419_v2 = vpop.f32.mrf.mxu3  ;;  %799 = vst [vmem:[%s1026_s8 + $0x28] sm:$0xff] %v743_v62   ;;  %v400_v3 = vadd.f32 %v1015_v20, %v399_v1  ;;  %v362_v5 = vpop.f32.mrf.mxu0 }
  0xb6   : > { %v420_v4 = vadd.f32 %v1015_v20, %v419_v2  ;;  %v382_v6 = vpop.f32.mrf.mxu1  ;;  %v363_v13 = vadd.f32 %v1015_v20, %v362_v5 }
  0xb7   : > { %v451_v9 = vmax.f32 %v400_v3, 0.0  ;;  %v383_v14 = vadd.f32 %v1015_v20, %v382_v6 }
  0xb8   : > { %v459_v10 = vmax.f32 %v420_v4, 0.0  ;;  %v436_v22 = vmax.f32 %v363_v13, 0.0 }
  0xb9   : > { %v763_v11 = vpack.c.bf16 %v451_v9, %v450_v7  ;;  %v444_v23 = vmax.f32 %v383_v14, 0.0 }
  0xba   : > { %v783_v12 = vpack.c.bf16 %v459_v10, %v458_v8 }
  0xbb   : > { %803 = vst [vmem:[%s1026_s8 + $0x48] sm:$0xff] %v763_v11  }
  0xbc   : > { %807 = vst [vmem:[%s1026_s8 + $0x68] sm:$0xff] %v783_v12   ;;  %v402_v15 = vpop.f32.mrf.mxu2 }
  0xbd   : > { %v422_v16 = vpop.f32.mrf.mxu3  ;;  %v364_v17 = vpop.f32.mrf.mxu0  ;;  %v403_v28 = vadd.f32 %v1015_v20, %v402_v15 }
  0xbe   : > { %v384_v18 = vpop.f32.mrf.mxu1  ;;  %v365_v19 = vadd.f32 %v1015_v20, %v364_v17  ;;  %v423_v29 = vadd.f32 %v1015_v20, %v422_v16 }
  0xbf   : > { %v385_v21 = vadd.f32 %v1015_v20, %v384_v18  ;;  %v452_v36 = vmax.f32 %v403_v28, 0.0 }
  0xc0   : > { %v437_v24 = vmax.f32 %v365_v19, 0.0  ;;  %v460_v37 = vmax.f32 %v423_v29, 0.0 }
  0xc1   : > { %v445_v25 = vmax.f32 %v385_v21, 0.0 }
  0xc2   : > { %v728_v26 = vpack.c.bf16 %v437_v24, %v436_v22 }
  0xc3   : > { %v748_v27 = vpack.c.bf16 %v445_v25, %v444_v23 }
  0xc4   : > { %796 = vst [vmem:[%s1026_s8 + $0x10] sm:$0xff] %v728_v26   ;;  %v404_v30 = vpop.f32.mrf.mxu2 }
  0xc5   : > { %v424_v31 = vpop.f32.mrf.mxu3  ;;  %800 = vst [vmem:[%s1026_s8 + $0x30] sm:$0xff] %v748_v27   ;;  %v405_v32 = vadd.f32 %v1015_v20, %v404_v30  ;;  %v367_v34 = vpop.f32.mrf.mxu0 }
  0xc6   : > { %v425_v33 = vadd.f32 %v1015_v20, %v424_v31  ;;  %v387_v35 = vpop.f32.mrf.mxu1  ;;  %v368_v42 = vadd.f32 %v1015_v20, %v367_v34 }
  0xc7   : > { %v453_v38 = vmax.f32 %v405_v32, 0.0  ;;  %v388_v43 = vadd.f32 %v1015_v20, %v387_v35 }
  0xc8   : > { %v461_v39 = vmax.f32 %v425_v33, 0.0  ;;  %v438_v50 = vmax.f32 %v368_v42, 0.0 }
  0xc9   : > { %v768_v40 = vpack.c.bf16 %v453_v38, %v452_v36  ;;  %v446_v51 = vmax.f32 %v388_v43, 0.0 }
  0xca   : > { %v788_v41 = vpack.c.bf16 %v461_v39, %v460_v37 }
  0xcb   : > { %804 = vst [vmem:[%s1026_s8 + $0x50] sm:$0xff] %v768_v40  }
  0xcc   : > { %808 = vst [vmem:[%s1026_s8 + $0x70] sm:$0xff] %v788_v41   ;;  %v407_v44 = vpop.f32.mrf.mxu2 }
  0xcd   : > { %v427_v45 = vpop.f32.mrf.mxu3  ;;  %v369_v46 = vpop.f32.mrf.mxu0  ;;  %v408_v56 = vadd.f32 %v1015_v20, %v407_v44 }
  0xce   : > { %v389_v47 = vpop.f32.mrf.mxu1  ;;  %v370_v48 = vadd.f32 %v1015_v20, %v369_v46  ;;  %v428_v57 = vadd.f32 %v1015_v20, %v427_v45 }
  0xcf   : > { %v390_v49 = vadd.f32 %v1015_v20, %v389_v47  ;;  %v454_v62 = vmax.f32 %v408_v56, 0.0 }
  0xd0   : > { %v439_v52 = vmax.f32 %v370_v48, 0.0  ;;  %v462_v63 = vmax.f32 %v428_v57, 0.0 }
  0xd1   : > { %v447_v53 = vmax.f32 %v390_v49, 0.0 }
  0xd2   : > { %v733_v54 = vpack.c.bf16 %v439_v52, %v438_v50 }
  0xd3   : > { %v753_v55 = vpack.c.bf16 %v447_v53, %v446_v51 }
  0xd4   : > { %797 = vst [vmem:[%s1026_s8 + $0x18] sm:$0xff] %v733_v54   ;;  %v409_v58 = vpop.f32.mrf.mxu2 }
  0xd5   : > { %v429_v59 = vpop.f32.mrf.mxu3  ;;  %801 = vst [vmem:[%s1026_s8 + $0x38] sm:$0xff] %v753_v55   ;;  %v410_v60 = vadd.f32 %v1015_v20, %v409_v58 }
  0xd6   : > { %v430_v61 = vadd.f32 %v1015_v20, %v429_v59 }
  0xd7   : > { %v455_v0 = vmax.f32 %v410_v60, 0.0 }
  0xd8   : > { %v463_v1 = vmax.f32 %v430_v61, 0.0 }
  0xd9   : > { %v773_v2 = vpack.c.bf16 %v455_v0, %v454_v62 }
  0xda   : > { %v793_v3 = vpack.c.bf16 %v463_v1, %v462_v63 }
  0xdb   : > { %805 = vst [vmem:[%s1026_s8 + $0x58] sm:$0xff] %v773_v2  }
  0xdc   : > { %809 = vst [vmem:[%s1026_s8 + $0x78] sm:$0xff] %v793_v3  }
  0xdd   : > { %882 = shalt.err (!%p879_p3)
}
  0xde   : > { %s919_s4 = smov 64   ;;  %s920_s5 = smov 4  }
  0xdf   : > { %813 = dma.vmem_to_hbm [thread:$0]  (%p979_p5), %s542_s16, 2048, %s544_s19, %s529_s20, %s919_s4, %s919_s4, %s920_s5  }
  0xe0 PF: > { %p819_p4 = scmp.ge.s32.totalorder %s917_s15, 2  ;;  %s558_s6 = sand.u32 1, %s905_s12  }
  0xe1   : > { %s559_s7 = scalar_lea.sflag [#allocation3], %s558_s6 }
  0xe2   : > { %p816_p7 = pnand %p819_p4, %p983_p6 }
  0xe4   : > { %p817_p8 = pneg %p816_p7 }
  0xe6   : > { %900 = dma.done.wait (%p817_p8), %s559_s7, 2048  }
  0xe7   : > { %902 = vsyncadd (%p817_p8), %s559_s7, 4294965248  ;;  %p13_p9 = scmp.ge.s32.totalorder %s966_s18, 4   ;;  %s1110_s12 = smov %s909_s13 }
  0xe8   : > { %s1111_s13 = smov %s913_s14  ;;  %s1112_s14 = smov %s977_s21 }
  0xe9   : > { %s1113_s15 = smov %s966_s18  ;;  %15 = sbr.rel (!%p13_p9) target bundleno = 3 (0x3), region = 67 }
  0xee   :  { %565 = vsyncpa [#allocation3], 1 }
  0xef   :  { %567 = vsyncpa [#allocation3 + $0x1], 1 }

</bundles_post_ra>
